<compile_context>
chip_gen: v5e
topology: v5e:2x2
jax: 0.10.0
libtpu: 0.0.40
codegen_flags: <defaults>
</compile_context>

<pallas_src>
import jax
import jax.numpy as jnp
from jax.experimental import pallas as pl
from jax.experimental.pallas import tpu as pltpu


# -----------------------------------------------------------------------------
# Kernel
# -----------------------------------------------------------------------------
def _qnet_kernel(x_ref, w_in_ref, b_in_ref, w1_ref, b1_ref, w2_ref, b2_ref,
                 out_ref):
    """One batch tile of the fused Q_Net forward.

    x_ref:   (tm, 3*v_dim)     bf16 input tile [feature | mean_feat | var_feat]
    w_in_ref:(3*v_dim, 3*h_dim) bf16 fused branch weights (block structured)
    b_in_ref:(1, 3*h_dim)      f32 fused branch biases
    w1_ref:  (3*h_dim, h_dim)  bf16,  b1_ref: (1, h_dim) f32
    w2_ref:  (1, h_dim)        f32 (fc2 weight as a row, VPU operand)
    b2_ref:  (1, 1)            f32 scalar in SMEM
    out_ref: (tm, 1)           f32
    """
    x = x_ref[...]

    # Branch layer: tanh(x @ W_in + b_in) == [f_pre | f_fst | f_scd]
    # bf16 MXU operands, f32 accumulation, f32 tanh (EUP).
    h_all = jnp.tanh(
        jnp.dot(x, w_in_ref[...], preferred_element_type=jnp.float32)
        + b_in_ref[...])

    # fc1 + ReLU (single matmul over the already-concatenated h_all).
    q_hidden = jnp.maximum(
        jnp.dot(h_all.astype(jnp.bfloat16), w1_ref[...],
                preferred_element_type=jnp.float32)
        + b1_ref[...],
        0.0)

    # fc2 (output width 1): VPU multiply + lane reduction, keep it off the MXU.
    q = jnp.sum(q_hidden * w2_ref[...], axis=-1, keepdims=True) + b2_ref[0, 0]
    out_ref[...] = q.astype(out_ref.dtype)


# -----------------------------------------------------------------------------
# Wrapper
# -----------------------------------------------------------------------------
def _round_up(n, m):
    return ((n + m - 1) // m) * m


def q_net_forward(x, fused_params, *, block_b=4096):
    """x: (B, 3*v_dim) float32. Returns q: (B, 1) float32."""
    B, D = x.shape
    w_in, b_in, w1, b1, w2_row, b2 = fused_params

    # --- Batch tile selection ------------------------------------------------
    # Big tiles amortize per-grid-step overhead; keep >= 2 (even) grid steps so
    # both v7x TensorCores get work.  Sublane granularity 16 (bf16 packing),
    # falling back to 8 for tiny batches so the demo block matches the array
    # exactly.
    n_steps = max(2, pl.cdiv(B, block_b))
    n_steps += n_steps % 2                       # even split across 2 TCs (v7x)
    gran = 16 if B >= 16 else 8
    tm = min(block_b, _round_up(pl.cdiv(B, n_steps), gran))
    grid = (pl.cdiv(B, tm),)
    bp = grid[0] * tm                            # >= B; no host pad of x

    # bf16 MXU operands; under jit this cast fuses with the producer of x,
    # halving the dominant HBM read traffic.  Accumulation stays f32 in-kernel.
    x_bf16 = x.astype(jnp.bfloat16)

    out = pl.pallas_call(
        _qnet_kernel,
        out_shape=jax.ShapeDtypeStruct((bp, 1), jnp.float32),
        grid=grid,
        in_specs=[
            # Batch-tiled input: auto double-buffered HBM->VMEM pipeline.
            # Ragged last block (when tm does not divide B) reads OOB garbage
            # rows that are discarded by the out[:B] slice below.
            pl.BlockSpec((tm, D), lambda i: (i, 0)),
            # Weights / biases: constant index_map -> DMA'd once, VMEM-resident.
            pl.BlockSpec(w_in.shape, lambda i: (0, 0)),
            pl.BlockSpec(b_in.shape, lambda i: (0, 0)),
            pl.BlockSpec(w1.shape, lambda i: (0, 0)),
            pl.BlockSpec(b1.shape, lambda i: (0, 0)),
            pl.BlockSpec(w2_row.shape, lambda i: (0, 0)),
            # b2 is a single scalar -> SMEM (avoids a padded (8,128) VMEM tile).
            pl.BlockSpec(memory_space=pltpu.MemorySpace.SMEM),
        ],
        out_specs=pl.BlockSpec((tm, 1), lambda i: (i, 0)),
        compiler_params=pltpu.CompilerParams(
            dimension_semantics=("parallel",)),
    )(x_bf16, w_in, b_in, w1, b1, w2_row, b2)

    return out[:B]


# -----------------------------------------------------------------------------
# Parameter init / fusion / reference
# -----------------------------------------------------------------------------
def init_params(key, v_dim, h_dim):
    """Deterministic parameter init (uniform, PyTorch-Linear-style bounds).

    Weights stored as (in_features, out_features)."""
    ks = jax.random.split(key, 10)

    def linear(kw, kb, fan_in, fan_out):
        bound = 1.0 / jnp.sqrt(fan_in)
        w = jax.random.uniform(kw, (fan_in, fan_out), jnp.float32, -bound, bound)
        b = jax.random.uniform(kb, (1, fan_out), jnp.float32, -bound, bound)
        return w, b

    w_pre, b_pre = linear(ks[0], ks[1], v_dim, h_dim)
    w_fst, b_fst = linear(ks[2], ks[3], v_dim, h_dim)
    w_scd, b_scd = linear(ks[4], ks[5], v_dim, h_dim)
    w1, b1 = linear(ks[6], ks[7], h_dim * 3, h_dim)
    w2, b2 = linear(ks[8], ks[9], h_dim, 1)
    return (w_pre, b_pre, w_fst, b_fst, w_scd, b_scd, w1, b1, w2, b2)


def fuse_params(params, *, v_dim, h_dim):
    """Host-side fusion of the three branch Linears into one block matrix.

    [feat | mean | var] @ W_in reproduces
      feat @ W_pre,  (mean - feat) @ W_fst,  var @ W_scd   exactly.
    MXU operands (W_in, W1) are pre-cast to bf16; biases stay f32; the fc2
    weight is reshaped to a (1, h_dim) f32 row for the in-kernel VPU reduction.
    """
    (w_pre, b_pre, w_fst, b_fst, w_scd, b_scd, w1, b1, w2, b2) = params
    z = jnp.zeros((v_dim, h_dim), jnp.float32)
    w_in = jnp.block([
        [w_pre, -w_fst, z],
        [z,      w_fst, z],
        [z,      z,     w_scd],
    ]).astype(jnp.bfloat16)                                   # (3*v_dim, 3*h_dim)
    b_in = jnp.concatenate([b_pre, b_fst, b_scd], axis=-1)    # (1, 3*h_dim) f32
    w2_row = w2.reshape(1, h_dim).astype(jnp.float32)         # (1, h_dim)
    b2_s = b2.reshape(1, 1).astype(jnp.float32)               # SMEM scalar
    return (w_in, b_in, w1.astype(jnp.bfloat16), b1, w2_row, b2_s)


def q_net_reference(x, params, *, v_dim):
    """Pure-JAX f32 reference mirroring the PyTorch forward (unfused params)."""
    (w_pre, b_pre, w_fst, b_fst, w_scd, b_scd, w1, b1, w2, b2) = params
    feat, mean, var = x[:, :v_dim], x[:, v_dim:2 * v_dim], x[:, 2 * v_dim:]
    f_pre = jnp.tanh(feat @ w_pre + b_pre)
    f_fst = jnp.tanh((mean - feat) @ w_fst + b_fst)
    f_scd = jnp.tanh(var @ w_scd + b_scd)
    f_merge = jnp.concatenate([f_pre, f_fst, f_scd], axis=-1)
    q = jnp.maximum(f_merge @ w1 + b1, 0.0)
    return q @ w2 + b2


# -----------------------------------------------------------------------------
# Demo / correctness check
# -----------------------------------------------------------------------------
if __name__ == "__main__":
    V_DIM, H_DIM = 16, 32

    key = jax.random.PRNGKey(0)
    k_x, k_x2, k_p = jax.random.split(key, 3)
    params = init_params(k_p, V_DIM, H_DIM)
    fused = fuse_params(params, v_dim=V_DIM, h_dim=H_DIM)

    # Tolerance is loosened vs the pure-f32 version because matmul operands are
    # bf16 (f32 accumulation); the remaining error is O(1e-3) for these shapes.
    ATOL = RTOL = 5e-2

    # Test 1: small batch, single grid step, blocks exactly match the arrays.
    x = jax.random.normal(k_x, (8, 3 * V_DIM), dtype=jnp.float32)
    q = jax.block_until_ready(q_net_forward(x, fused))
    q_ref = q_net_reference(x, params, v_dim=V_DIM)
    assert q.shape == (8, 1)
    assert jnp.allclose(q, q_ref, atol=ATOL, rtol=RTOL), "mismatch vs reference"

    # Test 2: ragged batch + multi-step grid (exercises the no-host-pad path).
    x2 = jax.random.normal(k_x2, (37, 3 * V_DIM), dtype=jnp.float32)
    q2 = jax.block_until_ready(q_net_forward(x2, fused, block_b=16))
    q2_ref = q_net_reference(x2, params, v_dim=V_DIM)
    assert q2.shape == (37, 1)
    assert jnp.allclose(q2, q2_ref, atol=ATOL, rtol=RTOL), "ragged mismatch"

    print("KERNEL_OK")
</pallas_src>

<mosaic_0001>
module attributes {stable_mosaic.version = 11 : i64} {
  func.func @_qnet_kernel(%arg0: i32, %arg1: memref<8x48xbf16, #tpu.memory_space<vmem>>, %arg2: memref<48x96xbf16, #tpu.memory_space<vmem>>, %arg3: memref<1x96xf32, #tpu.memory_space<vmem>>, %arg4: memref<96x32xbf16, #tpu.memory_space<vmem>>, %arg5: memref<1x32xf32, #tpu.memory_space<vmem>>, %arg6: memref<1x32xf32, #tpu.memory_space<vmem>>, %arg7: memref<1x1xf32, #tpu.memory_space<smem>>, %arg8: memref<8x1xf32, #tpu.memory_space<vmem>>) attributes {dimension_semantics = [#tpu.dimension_semantics<parallel>], iteration_bounds = array<i64: 1>, scalar_prefetch = 0 : i64, scratch_operands = 0 : i64, tpu.core_type = #tpu.core_type<tc>, window_params = [{transform_indices = @transform_0, window_bounds = array<i64: 8, 48>}, {pipeline_mode = #tpu.pipeline_mode<synchronous>, transform_indices = @transform_1, window_bounds = array<i64: 48, 96>}, {pipeline_mode = #tpu.pipeline_mode<synchronous>, transform_indices = @transform_2, window_bounds = array<i64: 1, 96>}, {pipeline_mode = #tpu.pipeline_mode<synchronous>, transform_indices = @transform_3, window_bounds = array<i64: 96, 32>}, {pipeline_mode = #tpu.pipeline_mode<synchronous>, transform_indices = @transform_4, window_bounds = array<i64: 1, 32>}, {pipeline_mode = #tpu.pipeline_mode<synchronous>, transform_indices = @transform_5, window_bounds = array<i64: 1, 32>}, {transform_indices = @transform_6, window_bounds = array<i64: 1, 1>}, {transform_indices = @transform_7, window_bounds = array<i64: 8, 1>}]} {
    %c0 = arith.constant 0 : index
    %c0_0 = arith.constant 0 : index
    %0 = vector.load %arg1[%c0, %c0_0] : memref<8x48xbf16, #tpu.memory_space<vmem>>, vector<8x48xbf16>
    %c0_1 = arith.constant 0 : index
    %c0_2 = arith.constant 0 : index
    %1 = vector.load %arg2[%c0_1, %c0_2] : memref<48x96xbf16, #tpu.memory_space<vmem>>, vector<48x96xbf16>
    %cst = arith.constant dense<0.000000e+00> : vector<8x96xf32>
    %2 = tpu.matmul %0, %1, %cst {dimension_numbers = #tpu.dot_dimension_numbers<[1], [0], [0], [1], [0, 0, 1, 1], [], []>} : vector<8x48xbf16>, vector<48x96xbf16>, vector<8x96xf32> -> vector<8x96xf32>
    %c0_3 = arith.constant 0 : index
    %c0_4 = arith.constant 0 : index
    %3 = vector.load %arg3[%c0_3, %c0_4] : memref<1x96xf32, #tpu.memory_space<vmem>>, vector<1x96xf32>
    %4 = vector.broadcast %3 : vector<1x96xf32> to vector<8x96xf32>
    %5 = arith.addf %2, %4 : vector<8x96xf32>
    %6 = math.tanh %5 : vector<8x96xf32>
    %7 = arith.truncf %6 : vector<8x96xf32> to vector<8x96xbf16>
    %c0_5 = arith.constant 0 : index
    %c0_6 = arith.constant 0 : index
    %8 = vector.load %arg4[%c0_5, %c0_6] : memref<96x32xbf16, #tpu.memory_space<vmem>>, vector<96x32xbf16>
    %cst_7 = arith.constant dense<0.000000e+00> : vector<8x32xf32>
    %9 = tpu.matmul %7, %8, %cst_7 {dimension_numbers = #tpu.dot_dimension_numbers<[1], [0], [0], [1], [0, 0, 1, 1], [], []>} : vector<8x96xbf16>, vector<96x32xbf16>, vector<8x32xf32> -> vector<8x32xf32>
    %c0_8 = arith.constant 0 : index
    %c0_9 = arith.constant 0 : index
    %10 = vector.load %arg5[%c0_8, %c0_9] : memref<1x32xf32, #tpu.memory_space<vmem>>, vector<1x32xf32>
    %11 = vector.broadcast %10 : vector<1x32xf32> to vector<8x32xf32>
    %12 = arith.addf %9, %11 : vector<8x32xf32>
    %cst_10 = arith.constant 0.000000e+00 : f32
    %13 = vector.broadcast %cst_10 : f32 to vector<8x32xf32>
    %14 = arith.maximumf %12, %13 : vector<8x32xf32>
    %c0_11 = arith.constant 0 : index
    %c0_12 = arith.constant 0 : index
    %15 = vector.load %arg6[%c0_11, %c0_12] : memref<1x32xf32, #tpu.memory_space<vmem>>, vector<1x32xf32>
    %16 = vector.broadcast %15 : vector<1x32xf32> to vector<8x32xf32>
    %17 = arith.mulf %14, %16 : vector<8x32xf32>
    %cst_13 = arith.constant dense<0.000000e+00> : vector<8xf32>
    %18 = vector.multi_reduction <add>, %17, %cst_13 [1] : vector<8x32xf32> to vector<8xf32>
    %19 = vector.shape_cast %18 : vector<8xf32> to vector<8x1xf32>
    %c0_14 = arith.constant 0 : index
    %c0_15 = arith.constant 0 : index
    %20 = memref.load %arg7[%c0_14, %c0_15] : memref<1x1xf32, #tpu.memory_space<smem>>
    %21 = vector.broadcast %20 : f32 to vector<8x1xf32>
    %22 = arith.addf %19, %21 : vector<8x1xf32>
    %c0_16 = arith.constant 0 : index
    %c0_17 = arith.constant 0 : index
    %23 = vector.load %arg8[%c0_16, %c0_17] : memref<8x1xf32, #tpu.memory_space<vmem>>, vector<8x1xf32>
    tpu.vector_store %arg8[%c0_16, %c0_17], %22 {strides = array<i32>} : memref<8x1xf32, #tpu.memory_space<vmem>>, vector<8x1xf32>,
    return
  }
  func.func @transform_0(%arg0: i32) -> (i32, i32) {
    %c0_i32 = arith.constant 0 : i32
    %c0_i32_0 = arith.constant 0 : i32
    return %arg0, %c0_i32 : i32, i32
  }
  func.func @transform_1(%arg0: i32) -> (i32, i32) {
    %c0_i32 = arith.constant 0 : i32
    %c0_i32_0 = arith.constant 0 : i32
    %c0_i32_1 = arith.constant 0 : i32
    return %c0_i32, %c0_i32_0 : i32, i32
  }
  func.func @transform_2(%arg0: i32) -> (i32, i32) {
    %c0_i32 = arith.constant 0 : i32
    %c0_i32_0 = arith.constant 0 : i32
    %c0_i32_1 = arith.constant 0 : i32
    return %c0_i32, %c0_i32_0 : i32, i32
  }
  func.func @transform_3(%arg0: i32) -> (i32, i32) {
    %c0_i32 = arith.constant 0 : i32
    %c0_i32_0 = arith.constant 0 : i32
    %c0_i32_1 = arith.constant 0 : i32
    return %c0_i32, %c0_i32_0 : i32, i32
  }
  func.func @transform_4(%arg0: i32) -> (i32, i32) {
    %c0_i32 = arith.constant 0 : i32
    %c0_i32_0 = arith.constant 0 : i32
    %c0_i32_1 = arith.constant 0 : i32
    return %c0_i32, %c0_i32_0 : i32, i32
  }
  func.func @transform_5(%arg0: i32) -> (i32, i32) {
    %c0_i32 = arith.constant 0 : i32
    %c0_i32_0 = arith.constant 0 : i32
    %c0_i32_1 = arith.constant 0 : i32
    return %c0_i32, %c0_i32_0 : i32, i32
  }
  func.func @transform_6(%arg0: i32) -> (i32, i32) {
    %c0_i32 = arith.constant 0 : i32
    %c0_i32_0 = arith.constant 0 : i32
    %c0_i32_1 = arith.constant 0 : i32
    return %c0_i32, %c0_i32_0 : i32, i32
  }
  func.func @transform_7(%arg0: i32) -> (i32, i32) {
    %c0_i32 = arith.constant 0 : i32
    %c0_i32_0 = arith.constant 0 : i32
    return %arg0, %c0_i32 : i32, i32
  }
}

</mosaic_0001>

<bundles_post_ra>
// kernel: tpu_custom_call.1
= control target key start
LH: loop header
LB: loop body
LE: loop exit
PB: predicated region body
PF: predicated region fallthrough
CT: control target
= control target key end

     0   :  { %vm57_vm0 = vcmask 392192   ;;  %vm128_vm1 = vcmask 785408   ;;  %vm151_vm2 = vcmask 261120   ;;  %vm158_vm3 = vcmask 7168   ;;  %s301_s1 = inlined_call_operand.vmem [shape: bf16[48,96], index: 1, kind: input, shape index: {}]   ;;  %s302_s3 = inlined_call_operand.vmem [shape: bf16[96,32], index: 3, kind: input, shape index: {}]   ;;  %s303_s2 = inlined_call_operand.vmem [shape: f32[1,96], index: 2, kind: input, shape index: {}]   ;;  %s304_s0 = inlined_call_operand.vmem [shape: bf16[8,48], index: 0, kind: input, shape index: {}]   ;;  %s305_s4 = inlined_call_operand.vmem [shape: f32[1,32], index: 4, kind: input, shape index: {}]   ;;  %s306_s5 = inlined_call_operand.vmem [shape: f32[1,32], index: 5, kind: input, shape index: {}]   ;;  %s307_s6 = inlined_call_operand.<no memory space> [shape: f32[1,1], index: 6, kind: input, shape index: {}]   ;;  %s308_s7 = inlined_call_operand.vmem [shape: f32[8,1], index: 7, kind: output, shape index: {}]  }
   0x1   :  { %v204_v0 = vld [vmem:[%s301_s1 + $0x10] sm:$0xff]  ;;  %v210_v1 = vld [vmem:[%s302_s3 + $0x28] sm:$0xff]  ;;  %v209_v3 = vld [vmem:[%s302_s3 + $0x20] sm:$0xff]  ;;  %v156_v24 = vstv %s307_s6 }
   0x2   :  { %66 = vmatpush.bf16.msra.mxu0 %v204_v0  ;;  %v203_v2 = vld [vmem:[%s301_s1 + $0x8] sm:$0xff]  ;;  %134 = vmatpush.bf16.msra.mxu1 %v210_v1  ;;  %v202_v4 = vld [vmem:[%s301_s1] sm:$0xff]  ;;  %v208_v5 = vld [vmem:[%s302_s3 + $0x18] sm:$0xff] }
   0x3   :  { %v28_v6 = vld [vmem:[%s304_s0] sm:$0xf]  ;;  %v207_v7 = vld [vmem:[%s302_s3 + $0x10] sm:$0xff]  ;;  %v206_v8 = vld [vmem:[%s302_s3 + $0x8] sm:$0xff] }
   0x4   :  { %v205_v9 = vld [vmem:[%s302_s3] sm:$0xff] }
   0x5   :  { %v211_v10 = vld [vmem:[%s303_s2] ss:$0 sm:$0xff] }
   0x6   :  { %67 = vmatpush.bf16.msra.mxu0 %v203_v2  ;;  %135 = vmatpush.bf16.msra.mxu1 %v209_v3  ;;  %v212_v16 = vld [vmem:[%s305_s4] ss:$0 sm:$0xff] }
   0x7   :  { %v213_v19 = vld [vmem:[%s306_s5] ss:$0 sm:$0xff] }
   0xa   :  { %68 = vmatpush.bf16.msra.mxu0 %v202_v4  ;;  %136 = vmatpush.bf16.msra.mxu1 %v208_v5 }
   0xd   :  { %176 = vmatmul.msk.bf16.vlgmr.msra.gmra.mxu0 %vm57_vm0, %v28_v6 }
   0xe   :  { %137 = vmatpush.bf16.msra.mxu1 %v207_v7 }
  0x12   :  { %138 = vmatpush.bf16.msra.mxu1 %v206_v8 }
  0x16   :  { %139 = vmatpush.bf16.msra.mxu1 %v205_v9 }
  0x8a   :  { %v70_v11 = vpop.f32.mrf.mxu0 }
  0x8b   :  { %v71_v12 = vadd.f32 %v211_v10, %v70_v11 }
  0x8d   :  { %214 = vtanh.f32 %v71_v12 }
  0x92   :  { %v72_v13 = vpop.f32.mrf.mxu0 }
  0x93   :  { %v215_v14 = vpop.eup %214 }
  0x94   :  { %v75_v15 = vpack.c.bf16 %v215_v14, %v215_v14 }
  0x96   :  { %201 = vmatmul.msk.bf16.vlgmr.msra.gmra.mxu1 %vm128_vm1, %v75_v15 }
 0x113   :  { %v141_v17 = vpop.f32.mrf.mxu1 }
 0x114   :  { %v142_v18 = vadd.f32 %v212_v16, %v141_v17 }
 0x116   :  { %v145_v20 = vmax.f32 %v142_v18, 0.0 }
 0x118   :  { %v150_v21 = vmul.f32 %v213_v19, %v145_v20 }
 0x11a   :  { %v152_v22 = vsel %vm151_vm2, %v150_v21, 0.0 }
 0x11b   :  { %v143_v23 = vpop.f32.mrf.mxu1  ;;  %153 = vadd.xlane.f32.xlu0 %v152_v22 }
 0x18e   :  { %v154_v25 = vpop.xlane.xlu0 %153 }
 0x18f   :  { %v157_v26 = vadd.f32 %v156_v24, %v154_v25 }
 0x191   :  { %159 = vst.msk [vmem:[%s308_s7] sm:$0xff] %vm158_vm3, %v157_v26 }

</bundles_post_ra>
